<compile_context>
chip_gen: v5e
topology: v5e:2x2
jax: 0.10.0
libtpu: 0.0.40
codegen_flags: <defaults>
</compile_context>

<pallas_src>
import functools

import jax
import jax.numpy as jnp
from jax.experimental import pallas as pl
from jax.experimental.pallas import tpu as pltpu

LANE = 128


def _round_up(x, m):
    return (x + m - 1) // m * m


def _mlp_kernel(n_hidden, uidx_ref, iidx_ref, uemb_ref, iemb_ref, *refs):
    """refs = (W1_user, W1_item, b1, W2, b2, ..., W_last, b_last, out_ref).

    Weights are bf16, zero-padded to 128-lane multiples; biases are f32 (also padded).
    Matmuls accumulate in f32 on the MXU; zero padding + ReLU keep padded lanes at exactly
    0, so padding never leaks into the real columns.  Scores are packed lane-dense before
    the sigmoid: out_ref[r, l] = sigmoid(logit of batch row r*128 + l).
    """
    out_ref = refs[-1]
    params = refs[:-1]

    tile_b = uidx_ref.shape[0]

    def gather(idx_ref, emb_ref):
        # Exact one-hot row gather on the MXU (tables are small and VMEM-resident).
        n_rows = emb_ref.shape[0]
        ids = idx_ref[...]                                              # (tile_b, 1) int32
        iota = jax.lax.broadcasted_iota(jnp.int32, (tile_b, n_rows), 1)
        onehot = jnp.where(ids == iota, 1.0, 0.0).astype(jnp.bfloat16)  # (tile_b, n_rows)
        return jnp.dot(onehot, emb_ref[...],
                       preferred_element_type=jnp.float32).astype(jnp.bfloat16)

    u = gather(uidx_ref, uemb_ref)       # (tile_b, emb_dim) bf16
    it = gather(iidx_ref, iemb_ref)      # (tile_b, emb_dim) bf16

    # First hidden layer; W1 split into user/item halves (== concat then matmul).
    w1u, w1i, b1 = params[0][...], params[1][...], params[2][...]
    a = (jnp.dot(u, w1u, preferred_element_type=jnp.float32)
         + jnp.dot(it, w1i, preferred_element_type=jnp.float32) + b1)
    h = jnp.maximum(a, 0.0).astype(jnp.bfloat16)

    # Remaining hidden layers.
    for k in range(n_hidden - 1):
        w = params[3 + 2 * k][...]
        b = params[4 + 2 * k][...]
        a = jnp.dot(h, w, preferred_element_type=jnp.float32) + b
        h = jnp.maximum(a, 0.0).astype(jnp.bfloat16)

    # Last linear.  Only column 0 of the 128-lane-padded output is real; padded weight
    # columns and bias lanes are zero, so every other column is exactly 0.
    w_last, b_last = params[-2][...], params[-1][...]
    logits = jnp.dot(h, w_last, preferred_element_type=jnp.float32) + b_last  # (tile_b, 128)

    # Pack scores lane-dense: batch row r*128 + l -> out[r, l].  XLU transpose of each
    # (128, 128) sub-block, then take sublane 0 (the real score column).  Sigmoid AFTER
    # packing so the EUP only sees one value per batch row.
    nblk = tile_b // LANE
    blocks = logits.reshape(nblk, LANE, LANE)
    scores = jnp.transpose(blocks, (0, 2, 1))[:, 0, :]                  # (nblk, 128) f32
    out_ref[...] = jax.nn.sigmoid(scores)


def prepare_params(hidden_params, last_params, emb_dim):
    """Split the first Linear into user/item halves, zero-pad feature dims to multiples of
    128, cast weights to bf16, keep biases f32."""
    (w1, b1), *rest = hidden_params
    out1 = w1.shape[1]
    out1_p = _round_up(out1, LANE)
    w1u = jnp.zeros((emb_dim, out1_p), jnp.float32).at[:, :out1].set(w1[:emb_dim])
    w1i = jnp.zeros((emb_dim, out1_p), jnp.float32).at[:, :out1].set(w1[emb_dim:])
    b1p = jnp.zeros((1, out1_p), jnp.float32).at[:, :out1].set(
        jnp.asarray(b1, jnp.float32).reshape(1, -1))
    flat = [w1u.astype(jnp.bfloat16), w1i.astype(jnp.bfloat16), b1p]

    prev = out1_p
    for w, b in rest + [last_params]:
        in_f, out_f = w.shape
        out_p = _round_up(out_f, LANE)
        wp = jnp.zeros((prev, out_p), jnp.float32).at[:in_f, :out_f].set(w)
        bp = jnp.zeros((1, out_p), jnp.float32).at[:, :out_f].set(
            jnp.asarray(b, jnp.float32).reshape(1, -1))
        flat += [wp.astype(jnp.bfloat16), bp]
        prev = out_p
    return flat


def mlp_forward_pallas(user_idxs, item_idxs, user_emb, item_emb,
                       hidden_params, last_params, *, tile_b=4096):
    """user_idxs/item_idxs: (B,) int32.  user_emb/item_emb: (num_users/items, emb_dim) f32.
    hidden_params: list of (W(in,out), b(1,out)).  last_params: (W(in,1), b(1,1)).
    Returns preds of shape (B,) f32."""
    B = user_idxs.shape[0]
    emb_dim = user_emb.shape[1]
    n_hidden = len(hidden_params)
    assert n_hidden >= 1, "need at least one hidden Linear layer"

    flat_params = prepare_params(hidden_params, last_params, emb_dim)
    assert flat_params[-2].shape[1] == LANE  # padded width of the final layer

    # ---- batch tiling -------------------------------------------------------------------
    # Packed output blocks are (tile_b//128, 128); when the grid has more than one step the
    # block's sublane dim must be a multiple of 8, i.e. tile_b a multiple of 1024.  Small
    # batches collapse to one full-array block (block == array dims is always legal).
    B128 = _round_up(B, LANE)
    req = max(1024, (int(tile_b) // 1024) * 1024)
    if B128 <= req:
        tile_b = B128
        B_pad = B128
    else:
        tile_b = req
        B_pad = _round_up(B128, tile_b)
    grid = (B_pad // tile_b,)

    # ---- inputs ---------------------------------------------------------------------------
    uidx = jnp.pad(user_idxs.astype(jnp.int32), (0, B_pad - B)).reshape(B_pad, 1)
    iidx = jnp.pad(item_idxs.astype(jnp.int32), (0, B_pad - B)).reshape(B_pad, 1)
    uemb = user_emb.astype(jnp.bfloat16)
    iemb = item_emb.astype(jnp.bfloat16)

    # Index blocks stream per grid step (double-buffered); tables + params stay
    # VMEM-resident across steps via constant index_maps.
    idx_spec = pl.BlockSpec((tile_b, 1), lambda i: (i, 0))
    table_specs = [pl.BlockSpec(uemb.shape, lambda i: (0, 0)),
                   pl.BlockSpec(iemb.shape, lambda i: (0, 0))]
    param_specs = [pl.BlockSpec(p.shape, lambda i: (0, 0)) for p in flat_params]
    out_spec = pl.BlockSpec((tile_b // LANE, LANE), lambda i: (i, 0))

    # ---- advisory cost estimate ------------------------------------------------------------
    weight_mats = ([flat_params[0], flat_params[1]]
                   + [flat_params[3 + 2 * k] for k in range(n_hidden - 1)]
                   + [flat_params[-2]])
    flops = 2 * B_pad * (int(uemb.shape[0]) * emb_dim + int(iemb.shape[0]) * emb_dim
                         + sum(int(w.shape[0]) * int(w.shape[1]) for w in weight_mats))
    param_bytes = (sum(int(p.size) * p.dtype.itemsize for p in flat_params)
                   + int(uemb.size) * 2 + int(iemb.size) * 2)
    bytes_accessed = int(2 * B_pad * 4 + param_bytes + B_pad * 4)  # idx in + params + packed out
    cost = pl.CostEstimate(flops=int(flops), transcendentals=int(B_pad),
                           bytes_accessed=bytes_accessed)

    out = pl.pallas_call(
        functools.partial(_mlp_kernel, n_hidden),
        out_shape=jax.ShapeDtypeStruct((B_pad // LANE, LANE), jnp.float32),
        grid=grid,
        in_specs=[idx_spec, idx_spec] + table_specs + param_specs,
        out_specs=out_spec,
        compiler_params=pltpu.CompilerParams(dimension_semantics=("parallel",)),
        cost_estimate=cost,
    )(uidx, iidx, uemb, iemb, *flat_params)

    # out[r, l] is the prediction for batch row r*128 + l; rows >= B are padding.
    return out.reshape(-1)[:B]


def init_params(key, num_users, num_items, mlp_layers):
    """Deterministic parameter init matching the PyTorch module's shapes."""
    emb_dim = mlp_layers[0] // 2
    keys = jax.random.split(key, 2 + 2 * len(mlp_layers))

    # Embedding tables ~ N(0, 1), like nn.Embedding default.
    user_emb = jax.random.normal(keys[0], (num_users, emb_dim), jnp.float32)
    item_emb = jax.random.normal(keys[1], (num_items, emb_dim), jnp.float32)

    def linear_init(kw, kb, in_feat, out_feat):
        bound = 1.0 / jnp.sqrt(jnp.float32(in_feat))
        w = jax.random.uniform(kw, (in_feat, out_feat), jnp.float32, -bound, bound)
        b = jax.random.uniform(kb, (1, out_feat), jnp.float32, -bound, bound)
        return w, b

    hidden_params = []
    ki = 2
    for in_feat, out_feat in zip(mlp_layers, mlp_layers[1:]):
        hidden_params.append(linear_init(keys[ki], keys[ki + 1], in_feat, out_feat))
        ki += 2
    last_params = linear_init(keys[ki], keys[ki + 1], mlp_layers[-1], 1)
    return user_emb, item_emb, hidden_params, last_params


def mlp_reference(user_idxs, item_idxs, user_emb, item_emb, hidden_params, last_params):
    u = jnp.take(user_emb, user_idxs, axis=0)
    it = jnp.take(item_emb, item_idxs, axis=0)
    h = jnp.concatenate([u, it], axis=-1)
    for w, b in hidden_params:
        h = jnp.maximum(h @ w + b, 0.0)
    logits = h @ last_params[0] + last_params[1]
    return jax.nn.sigmoid(logits).reshape(-1)


if __name__ == "__main__":
    num_users = 32
    num_items = 48
    mlp_layers = [32, 64, 32, 16]
    reg_layers = [2, 2]  # only sets embedding norm_type -> no-op (max_norm=None)

    key = jax.random.PRNGKey(0)
    k_params, k_u1, k_i1, k_u2, k_i2 = jax.random.split(key, 5)
    user_emb, item_emb, hidden_params, last_params = init_params(
        k_params, num_users, num_items, mlp_layers
    )

    # --- small single-tile check (B=24 -> one 128-row tile, grid=(1,)) ---
    B1 = 24
    u1 = jax.random.randint(k_u1, (B1,), 0, num_users, dtype=jnp.int32)
    i1 = jax.random.randint(k_i1, (B1,), 0, num_items, dtype=jnp.int32)
    preds1 = jax.block_until_ready(
        mlp_forward_pallas(u1, i1, user_emb, item_emb, hidden_params, last_params))
    ref1 = mlp_reference(u1, i1, user_emb, item_emb, hidden_params, last_params)
    assert preds1.shape == (B1,)
    # bf16 matmul operands with f32 accumulation -> relaxed tolerance vs the f32 reference.
    assert jnp.allclose(preds1, ref1, atol=2e-2, rtol=2e-2), (preds1, ref1)

    # --- multi-step grid check (exercises batch tiling + packed output across tiles) ---
    B2 = 2500
    u2 = jax.random.randint(k_u2, (B2,), 0, num_users, dtype=jnp.int32)
    i2 = jax.random.randint(k_i2, (B2,), 0, num_items, dtype=jnp.int32)
    preds2 = jax.block_until_ready(
        mlp_forward_pallas(u2, i2, user_emb, item_emb, hidden_params, last_params,
                           tile_b=1024))  # grid=(3,)
    ref2 = mlp_reference(u2, i2, user_emb, item_emb, hidden_params, last_params)
    assert preds2.shape == (B2,)
    assert jnp.allclose(preds2, ref2, atol=2e-2, rtol=2e-2), (preds2, ref2)

    print("KERNEL_OK")
</pallas_src>

<mosaic_0001>
module attributes {stable_mosaic.version = 11 : i64} {
  func.func @_mlp_kernel(%arg0: i32, %arg1: memref<128x1xi32, #tpu.memory_space<vmem>>, %arg2: memref<128x1xi32, #tpu.memory_space<vmem>>, %arg3: memref<32x16xbf16, #tpu.memory_space<vmem>>, %arg4: memref<48x16xbf16, #tpu.memory_space<vmem>>, %arg5: memref<16x128xbf16, #tpu.memory_space<vmem>>, %arg6: memref<16x128xbf16, #tpu.memory_space<vmem>>, %arg7: memref<1x128xf32, #tpu.memory_space<vmem>>, %arg8: memref<128x128xbf16, #tpu.memory_space<vmem>>, %arg9: memref<1x128xf32, #tpu.memory_space<vmem>>, %arg10: memref<128x128xbf16, #tpu.memory_space<vmem>>, %arg11: memref<1x128xf32, #tpu.memory_space<vmem>>, %arg12: memref<128x128xbf16, #tpu.memory_space<vmem>>, %arg13: memref<1x128xf32, #tpu.memory_space<vmem>>, %arg14: memref<1x128xf32, #tpu.memory_space<vmem>>) attributes {dimension_semantics = [#tpu.dimension_semantics<parallel>], iteration_bounds = array<i64: 1>, scalar_prefetch = 0 : i64, scratch_operands = 0 : i64, tpu.core_type = #tpu.core_type<tc>, window_params = [{transform_indices = @transform_0, window_bounds = array<i64: 128, 1>}, {transform_indices = @transform_1, window_bounds = array<i64: 128, 1>}, {pipeline_mode = #tpu.pipeline_mode<synchronous>, transform_indices = @transform_2, window_bounds = array<i64: 32, 16>}, {pipeline_mode = #tpu.pipeline_mode<synchronous>, transform_indices = @transform_3, window_bounds = array<i64: 48, 16>}, {pipeline_mode = #tpu.pipeline_mode<synchronous>, transform_indices = @transform_4, window_bounds = array<i64: 16, 128>}, {pipeline_mode = #tpu.pipeline_mode<synchronous>, transform_indices = @transform_5, window_bounds = array<i64: 16, 128>}, {pipeline_mode = #tpu.pipeline_mode<synchronous>, transform_indices = @transform_6, window_bounds = array<i64: 1, 128>}, {pipeline_mode = #tpu.pipeline_mode<synchronous>, transform_indices = @transform_7, window_bounds = array<i64: 128, 128>}, {pipeline_mode = #tpu.pipeline_mode<synchronous>, transform_indices = @transform_8, window_bounds = array<i64: 1, 128>}, {pipeline_mode = #tpu.pipeline_mode<synchronous>, transform_indices = @transform_9, window_bounds = array<i64: 128, 128>}, {pipeline_mode = #tpu.pipeline_mode<synchronous>, transform_indices = @transform_10, window_bounds = array<i64: 1, 128>}, {pipeline_mode = #tpu.pipeline_mode<synchronous>, transform_indices = @transform_11, window_bounds = array<i64: 128, 128>}, {pipeline_mode = #tpu.pipeline_mode<synchronous>, transform_indices = @transform_12, window_bounds = array<i64: 1, 128>}, {transform_indices = @transform_13, window_bounds = array<i64: 1, 128>}]} {
    %c0 = arith.constant 0 : index
    %c0_0 = arith.constant 0 : index
    %0 = vector.load %arg1[%c0, %c0_0] : memref<128x1xi32, #tpu.memory_space<vmem>>, vector<128x1xi32>
    %1 = tpu.iota {dimensions = array<i32: 1>} : vector<128x32xi32>
    %2 = vector.broadcast %0 : vector<128x1xi32> to vector<128x32xi32>
    %3 = arith.cmpi eq, %2, %1 : vector<128x32xi32>
    %cst = arith.constant 1.000000e+00 : f32
    %cst_1 = arith.constant 0.000000e+00 : f32
    %4 = vector.broadcast %cst : f32 to vector<128x32xf32>
    %5 = vector.broadcast %cst_1 : f32 to vector<128x32xf32>
    %6 = arith.select %3, %4, %5 : vector<128x32xi1>, vector<128x32xf32>
    %7 = arith.truncf %6 : vector<128x32xf32> to vector<128x32xbf16>
    %c0_2 = arith.constant 0 : index
    %c0_3 = arith.constant 0 : index
    %8 = vector.load %arg3[%c0_2, %c0_3] : memref<32x16xbf16, #tpu.memory_space<vmem>>, vector<32x16xbf16>
    %cst_4 = arith.constant dense<0.000000e+00> : vector<128x16xf32>
    %9 = tpu.matmul %7, %8, %cst_4 {dimension_numbers = #tpu.dot_dimension_numbers<[1], [0], [0], [1], [0, 0, 1, 1], [], []>} : vector<128x32xbf16>, vector<32x16xbf16>, vector<128x16xf32> -> vector<128x16xf32>
    %10 = arith.truncf %9 : vector<128x16xf32> to vector<128x16xbf16>
    %c0_5 = arith.constant 0 : index
    %c0_6 = arith.constant 0 : index
    %11 = vector.load %arg2[%c0_5, %c0_6] : memref<128x1xi32, #tpu.memory_space<vmem>>, vector<128x1xi32>
    %12 = tpu.iota {dimensions = array<i32: 1>} : vector<128x48xi32>
    %13 = vector.broadcast %11 : vector<128x1xi32> to vector<128x48xi32>
    %14 = arith.cmpi eq, %13, %12 : vector<128x48xi32>
    %cst_7 = arith.constant 1.000000e+00 : f32
    %cst_8 = arith.constant 0.000000e+00 : f32
    %15 = vector.broadcast %cst_7 : f32 to vector<128x48xf32>
    %16 = vector.broadcast %cst_8 : f32 to vector<128x48xf32>
    %17 = arith.select %14, %15, %16 : vector<128x48xi1>, vector<128x48xf32>
    %18 = arith.truncf %17 : vector<128x48xf32> to vector<128x48xbf16>
    %c0_9 = arith.constant 0 : index
    %c0_10 = arith.constant 0 : index
    %19 = vector.load %arg4[%c0_9, %c0_10] : memref<48x16xbf16, #tpu.memory_space<vmem>>, vector<48x16xbf16>
    %cst_11 = arith.constant dense<0.000000e+00> : vector<128x16xf32>
    %20 = tpu.matmul %18, %19, %cst_11 {dimension_numbers = #tpu.dot_dimension_numbers<[1], [0], [0], [1], [0, 0, 1, 1], [], []>} : vector<128x48xbf16>, vector<48x16xbf16>, vector<128x16xf32> -> vector<128x16xf32>
    %21 = arith.truncf %20 : vector<128x16xf32> to vector<128x16xbf16>
    %c0_12 = arith.constant 0 : index
    %c0_13 = arith.constant 0 : index
    %22 = vector.load %arg5[%c0_12, %c0_13] : memref<16x128xbf16, #tpu.memory_space<vmem>>, vector<16x128xbf16>
    %c0_14 = arith.constant 0 : index
    %c0_15 = arith.constant 0 : index
    %23 = vector.load %arg6[%c0_14, %c0_15] : memref<16x128xbf16, #tpu.memory_space<vmem>>, vector<16x128xbf16>
    %c0_16 = arith.constant 0 : index
    %c0_17 = arith.constant 0 : index
    %24 = vector.load %arg7[%c0_16, %c0_17] : memref<1x128xf32, #tpu.memory_space<vmem>>, vector<1x128xf32>
    %cst_18 = arith.constant dense<0.000000e+00> : vector<128x128xf32>
    %25 = tpu.matmul %10, %22, %cst_18 {dimension_numbers = #tpu.dot_dimension_numbers<[1], [0], [0], [1], [0, 0, 1, 1], [], []>} : vector<128x16xbf16>, vector<16x128xbf16>, vector<128x128xf32> -> vector<128x128xf32>
    %cst_19 = arith.constant dense<0.000000e+00> : vector<128x128xf32>
    %26 = tpu.matmul %21, %23, %cst_19 {dimension_numbers = #tpu.dot_dimension_numbers<[1], [0], [0], [1], [0, 0, 1, 1], [], []>} : vector<128x16xbf16>, vector<16x128xbf16>, vector<128x128xf32> -> vector<128x128xf32>
    %27 = arith.addf %25, %26 : vector<128x128xf32>
    %28 = vector.broadcast %24 : vector<1x128xf32> to vector<128x128xf32>
    %29 = arith.addf %27, %28 : vector<128x128xf32>
    %cst_20 = arith.constant 0.000000e+00 : f32
    %30 = vector.broadcast %cst_20 : f32 to vector<128x128xf32>
    %31 = arith.maximumf %29, %30 : vector<128x128xf32>
    %32 = arith.truncf %31 : vector<128x128xf32> to vector<128x128xbf16>
    %c0_21 = arith.constant 0 : index
    %c0_22 = arith.constant 0 : index
    %33 = vector.load %arg8[%c0_21, %c0_22] : memref<128x128xbf16, #tpu.memory_space<vmem>>, vector<128x128xbf16>
    %c0_23 = arith.constant 0 : index
    %c0_24 = arith.constant 0 : index
    %34 = vector.load %arg9[%c0_23, %c0_24] : memref<1x128xf32, #tpu.memory_space<vmem>>, vector<1x128xf32>
    %cst_25 = arith.constant dense<0.000000e+00> : vector<128x128xf32>
    %35 = tpu.matmul %32, %33, %cst_25 {dimension_numbers = #tpu.dot_dimension_numbers<[1], [0], [0], [1], [0, 0, 1, 1], [], []>} : vector<128x128xbf16>, vector<128x128xbf16>, vector<128x128xf32> -> vector<128x128xf32>
    %36 = vector.broadcast %34 : vector<1x128xf32> to vector<128x128xf32>
    %37 = arith.addf %35, %36 : vector<128x128xf32>
    %cst_26 = arith.constant 0.000000e+00 : f32
    %38 = vector.broadcast %cst_26 : f32 to vector<128x128xf32>
    %39 = arith.maximumf %37, %38 : vector<128x128xf32>
    %40 = arith.truncf %39 : vector<128x128xf32> to vector<128x128xbf16>
    %c0_27 = arith.constant 0 : index
    %c0_28 = arith.constant 0 : index
    %41 = vector.load %arg10[%c0_27, %c0_28] : memref<128x128xbf16, #tpu.memory_space<vmem>>, vector<128x128xbf16>
    %c0_29 = arith.constant 0 : index
    %c0_30 = arith.constant 0 : index
    %42 = vector.load %arg11[%c0_29, %c0_30] : memref<1x128xf32, #tpu.memory_space<vmem>>, vector<1x128xf32>
    %cst_31 = arith.constant dense<0.000000e+00> : vector<128x128xf32>
    %43 = tpu.matmul %40, %41, %cst_31 {dimension_numbers = #tpu.dot_dimension_numbers<[1], [0], [0], [1], [0, 0, 1, 1], [], []>} : vector<128x128xbf16>, vector<128x128xbf16>, vector<128x128xf32> -> vector<128x128xf32>
    %44 = vector.broadcast %42 : vector<1x128xf32> to vector<128x128xf32>
    %45 = arith.addf %43, %44 : vector<128x128xf32>
    %cst_32 = arith.constant 0.000000e+00 : f32
    %46 = vector.broadcast %cst_32 : f32 to vector<128x128xf32>
    %47 = arith.maximumf %45, %46 : vector<128x128xf32>
    %48 = arith.truncf %47 : vector<128x128xf32> to vector<128x128xbf16>
    %c0_33 = arith.constant 0 : index
    %c0_34 = arith.constant 0 : index
    %49 = vector.load %arg12[%c0_33, %c0_34] : memref<128x128xbf16, #tpu.memory_space<vmem>>, vector<128x128xbf16>
    %c0_35 = arith.constant 0 : index
    %c0_36 = arith.constant 0 : index
    %50 = vector.load %arg13[%c0_35, %c0_36] : memref<1x128xf32, #tpu.memory_space<vmem>>, vector<1x128xf32>
    %cst_37 = arith.constant dense<0.000000e+00> : vector<128x128xf32>
    %51 = tpu.matmul %48, %49, %cst_37 {dimension_numbers = #tpu.dot_dimension_numbers<[1], [0], [0], [1], [0, 0, 1, 1], [], []>} : vector<128x128xbf16>, vector<128x128xbf16>, vector<128x128xf32> -> vector<128x128xf32>
    %52 = vector.broadcast %50 : vector<1x128xf32> to vector<128x128xf32>
    %53 = arith.addf %51, %52 : vector<128x128xf32>
    %54 = vector.shape_cast %53 : vector<128x128xf32> to vector<1x128x128xf32>
    %55 = tpu.transpose %54, [0, 2, 1] : vector<1x128x128xf32> -> vector<1x128x128xf32>
    %56 = vector.extract_strided_slice %55 {offsets = [0, 0, 0], sizes = [1, 1, 128], strides = [1, 1, 1]} : vector<1x128x128xf32> to vector<1x1x128xf32>
    %57 = vector.shape_cast %56 : vector<1x1x128xf32> to vector<1x128xf32>
    %58 = arith.negf %57 : vector<1x128xf32>
    %59 = math.exp %58 : vector<1x128xf32>
    %cst_38 = arith.constant 1.000000e+00 : f32
    %60 = vector.broadcast %cst_38 : f32 to vector<1x128xf32>
    %61 = arith.addf %60, %59 : vector<1x128xf32>
    %62 = arith.divf %60, %61 : vector<1x128xf32>
    %c0_39 = arith.constant 0 : index
    %c0_40 = arith.constant 0 : index
    %63 = vector.load %arg14[%c0_39, %c0_40] : memref<1x128xf32, #tpu.memory_space<vmem>>, vector<1x128xf32>
    tpu.vector_store %arg14[%c0_39, %c0_40], %62 {strides = array<i32>} : memref<1x128xf32, #tpu.memory_space<vmem>>, vector<1x128xf32>,
    return
  }
  func.func @transform_0(%arg0: i32) -> (i32, i32) {
    %c0_i32 = arith.constant 0 : i32
    %c0_i32_0 = arith.constant 0 : i32
    return %arg0, %c0_i32 : i32, i32
  }
  func.func @transform_1(%arg0: i32) -> (i32, i32) {
    %c0_i32 = arith.constant 0 : i32
    %c0_i32_0 = arith.constant 0 : i32
    return %arg0, %c0_i32 : i32, i32
  }
  func.func @transform_2(%arg0: i32) -> (i32, i32) {
    %c0_i32 = arith.constant 0 : i32
    %c0_i32_0 = arith.constant 0 : i32
    %c0_i32_1 = arith.constant 0 : i32
    return %c0_i32, %c0_i32_0 : i32, i32
  }
  func.func @transform_3(%arg0: i32) -> (i32, i32) {
    %c0_i32 = arith.constant 0 : i32
    %c0_i32_0 = arith.constant 0 : i32
    %c0_i32_1 = arith.constant 0 : i32
    return %c0_i32, %c0_i32_0 : i32, i32
  }
  func.func @transform_4(%arg0: i32) -> (i32, i32) {
    %c0_i32 = arith.constant 0 : i32
    %c0_i32_0 = arith.constant 0 : i32
    %c0_i32_1 = arith.constant 0 : i32
    return %c0_i32, %c0_i32_0 : i32, i32
  }
  func.func @transform_5(%arg0: i32) -> (i32, i32) {
    %c0_i32 = arith.constant 0 : i32
    %c0_i32_0 = arith.constant 0 : i32
    %c0_i32_1 = arith.constant 0 : i32
    return %c0_i32, %c0_i32_0 : i32, i32
  }
  func.func @transform_6(%arg0: i32) -> (i32, i32) {
    %c0_i32 = arith.constant 0 : i32
    %c0_i32_0 = arith.constant 0 : i32
    %c0_i32_1 = arith.constant 0 : i32
    return %c0_i32, %c0_i32_0 : i32, i32
  }
  func.func @transform_7(%arg0: i32) -> (i32, i32) {
    %c0_i32 = arith.constant 0 : i32
    %c0_i32_0 = arith.constant 0 : i32
    %c0_i32_1 = arith.constant 0 : i32
    return %c0_i32, %c0_i32_0 : i32, i32
  }
  func.func @transform_8(%arg0: i32) -> (i32, i32) {
    %c0_i32 = arith.constant 0 : i32
    %c0_i32_0 = arith.constant 0 : i32
    %c0_i32_1 = arith.constant 0 : i32
    return %c0_i32, %c0_i32_0 : i32, i32
  }
  func.func @transform_9(%arg0: i32) -> (i32, i32) {
    %c0_i32 = arith.constant 0 : i32
    %c0_i32_0 = arith.constant 0 : i32
    %c0_i32_1 = arith.constant 0 : i32
    return %c0_i32, %c0_i32_0 : i32, i32
  }
  func.func @transform_10(%arg0: i32) -> (i32, i32) {
    %c0_i32 = arith.constant 0 : i32
    %c0_i32_0 = arith.constant 0 : i32
    %c0_i32_1 = arith.constant 0 : i32
    return %c0_i32, %c0_i32_0 : i32, i32
  }
  func.func @transform_11(%arg0: i32) -> (i32, i32) {
    %c0_i32 = arith.constant 0 : i32
    %c0_i32_0 = arith.constant 0 : i32
    %c0_i32_1 = arith.constant 0 : i32
    return %c0_i32, %c0_i32_0 : i32, i32
  }
  func.func @transform_12(%arg0: i32) -> (i32, i32) {
    %c0_i32 = arith.constant 0 : i32
    %c0_i32_0 = arith.constant 0 : i32
    %c0_i32_1 = arith.constant 0 : i32
    return %c0_i32, %c0_i32_0 : i32, i32
  }
  func.func @transform_13(%arg0: i32) -> (i32, i32) {
    %c0_i32 = arith.constant 0 : i32
    %c0_i32_0 = arith.constant 0 : i32
    return %arg0, %c0_i32 : i32, i32
  }
}

</mosaic_0001>

<bundles_post_ra>
// kernel: tpu_custom_call.1
= control target key start
LH: loop header
LB: loop body
LE: loop exit
PB: predicated region body
PF: predicated region fallthrough
CT: control target
= control target key end

     0   :  { %v1364_v3 = vmov 0   ;;  %s1775_s0 = inlined_call_operand.vmem [shape: s32[128,1], index: 0, kind: input, shape index: {}]   ;;  %s1776_s1 = inlined_call_operand.vmem [shape: s32[128,1], index: 1, kind: input, shape index: {}]   ;;  %s1777_s2 = inlined_call_operand.vmem [shape: bf16[32,16], index: 2, kind: input, shape index: {}]   ;;  %s1778_s3 = inlined_call_operand.vmem [shape: bf16[48,16], index: 3, kind: input, shape index: {}]   ;;  %s1779_s4 = inlined_call_operand.vmem [shape: bf16[16,128], index: 4, kind: input, shape index: {}]   ;;  %s1780_s5 = inlined_call_operand.vmem [shape: bf16[16,128], index: 5, kind: input, shape index: {}]   ;;  %s1781_s6 = inlined_call_operand.vmem [shape: f32[1,128], index: 6, kind: input, shape index: {}]   ;;  %s1782_s7 = inlined_call_operand.vmem [shape: bf16[128,128], index: 7, kind: input, shape index: {}]   ;;  %s1783_s8 = inlined_call_operand.vmem [shape: f32[1,128], index: 8, kind: input, shape index: {}]   ;;  %s1784_s9 = inlined_call_operand.vmem [shape: bf16[128,128], index: 9, kind: input, shape index: {}]   ;;  %s1785_s10 = inlined_call_operand.vmem [shape: f32[1,128], index: 10, kind: input, shape index: {}]   ;;  %s1786_s11 = inlined_call_operand.vmem [shape: bf16[128,128], index: 11, kind: input, shape index: {}]   ;;  %s1787_s12 = inlined_call_operand.vmem [shape: f32[1,128], index: 12, kind: input, shape index: {}]   ;;  %s1788_s13 = inlined_call_operand.hbm [shape: f32[1,128], index: 13, kind: output, shape index: {}]  }
   0x1   :  { %v54_v0 = vld [vmem:[%s1775_s0 + $0x40] sm:$0xff]  ;;  %v52_v1 = vld [vmem:[%s1775_s0 + $0x30] sm:$0xff]  ;;  %1329 = vset.pattern.permute.xlu2 %v1364_v3  ;;  %1328 = vset.pattern.permute.xlu1 %v1364_v3 }
   0x2   :  { %v50_v2 = vld [vmem:[%s1775_s0 + $0x20] sm:$0xff]  ;;  %1327 = vset.pattern.permute.xlu0 %v1364_v3  ;;  %89 = vperm.xlu2 %1329, %v54_v0  }
   0x3   :  { %83 = vperm.xlu1 %1328, %v52_v1   ;;  %77 = vperm.xlu0 %1327, %v50_v2  }
   0x4   :  { %18 = vsyncpa [#allocation3], 0  ;;  %v55_v4 = vld [vmem:[%s1775_s0 + $0x48] sm:$0xff]  ;;  %v53_v5 = vld [vmem:[%s1775_s0 + $0x38] sm:$0xff]  ;;  %v62_v37 = vlaneseq  ;;  %v1365_v44 = vmov 0.0   ;;  %vm168_vm2 = vcmask 261120  }
   0x5   :  { %v51_v6 = vld [vmem:[%s1775_s0 + $0x28] sm:$0xff]  ;;  %v58_v7 = vld [vmem:[%s1775_s0 + $0x60] sm:$0xff]  ;;  %v57_v8 = vld [vmem:[%s1775_s0 + $0x58] sm:$0xff] }
   0x6   :  { %v56_v9 = vld [vmem:[%s1775_s0 + $0x50] sm:$0xff]  ;;  %v61_v10 = vld [vmem:[%s1775_s0 + $0x78] sm:$0xff]  ;;  %v59_v12 = vld [vmem:[%s1775_s0 + $0x68] sm:$0xff]  ;;  %v1542_v40 = vand.u32 127, %v62_v37 }
   0x7   :  { %v60_v11 = vld [vmem:[%s1775_s0 + $0x70] sm:$0xff]  ;;  %v250_v13 = vld [vmem:[%s1776_s1] sm:$0xff]  ;;  %v47_v14 = vld [vmem:[%s1775_s0 + $0x8] sm:$0xff] }
   0x8   :  { %v46_v15 = vld [vmem:[%s1775_s0] sm:$0xff]  ;;  %v49_v16 = vld [vmem:[%s1775_s0 + $0x18] sm:$0xff]  ;;  %v48_v17 = vld [vmem:[%s1775_s0 + $0x10] sm:$0xff]  ;;  %s1125_s0 = sshll.u32 %s1788_s13, 4  ;;  %s1126_s0 = int_to_ptr.hbm [resolvable:$true] %s1125_s0 }
   0x9   :  { %v251_v18 = vld [vmem:[%s1776_s1 + $0x8] sm:$0xff]  ;;  %v254_v19 = vld [vmem:[%s1776_s1 + $0x20] sm:$0xff]  ;;  %v253_v20 = vld [vmem:[%s1776_s1 + $0x18] sm:$0xff] }
   0xa   :  { %92 = vperm.xlu2 %1329, %v55_v4   ;;  %v252_v21 = vld [vmem:[%s1776_s1 + $0x10] sm:$0xff]  ;;  %v257_v22 = vld [vmem:[%s1776_s1 + $0x38] sm:$0xff]  ;;  %v255_v24 = vld [vmem:[%s1776_s1 + $0x28] sm:$0xff] }
   0xb   :  { %86 = vperm.xlu1 %1328, %v53_v5   ;;  %80 = vperm.xlu0 %1327, %v51_v6   ;;  %v256_v23 = vld [vmem:[%s1776_s1 + $0x30] sm:$0xff]  ;;  %v259_v26 = vld [vmem:[%s1776_s1 + $0x48] sm:$0xff]  ;;  %v258_v27 = vld [vmem:[%s1776_s1 + $0x40] sm:$0xff] }
   0xc   :  { %v260_v25 = vld [vmem:[%s1776_s1 + $0x50] sm:$0xff]  ;;  %v263_v28 = vld [vmem:[%s1776_s1 + $0x68] sm:$0xff]  ;;  %v262_v29 = vld [vmem:[%s1776_s1 + $0x60] sm:$0xff] }
   0xd   :  { %v261_v30 = vld [vmem:[%s1776_s1 + $0x58] sm:$0xff]  ;;  %v264_v32 = vld [vmem:[%s1776_s1 + $0x70] sm:$0xff]  ;;  %v1292_v33 = vld [vmem:[%s1777_s2 + $0x8] sm:$0xff] }
   0xe   :  { %v265_v31 = vld [vmem:[%s1776_s1 + $0x78] sm:$0xff]  ;;  %1322 = vmatpush.bf16.msra.mxu1 %v1292_v33  ;;  %199 = vmatpush.bf16.msra.mxu0 %v1292_v33  ;;  %v1291_v34 = vld [vmem:[%s1777_s2] sm:$0xff]  ;;  %v1295_v35 = vld [vmem:[%s1778_s3 + $0x10] sm:$0xff] }
   0xf   :  { %v1294_v48 = vld [vmem:[%s1778_s3 + $0x8] sm:$0xff]  ;;  %v1293_v4 = vld [vmem:[%s1778_s3] sm:$0xff] }
  0x12   :  { %101 = vperm.xlu2 %1329, %v58_v7   ;;  %1323 = vmatpush.bf16.msra.mxu1 %v1291_v34 }
  0x13   :  { %98 = vperm.xlu1 %1328, %v57_v8   ;;  %95 = vperm.xlu0 %1327, %v56_v9  }
  0x14   :  { %200 = vmatpush.bf16.msra.mxu0 %v1291_v34 }
  0x16   :  { %408 = vmatpush.bf16.msrb.mxu1 %v1295_v35 }
  0x1a   :  { %110 = vperm.xlu2 %1329, %v61_v10   ;;  %409 = vmatpush.bf16.msrb.mxu1 %v1294_v48 }
  0x1b   :  { %107 = vperm.xlu1 %1328, %v60_v11   ;;  %104 = vperm.xlu0 %1327, %v59_v12  }
  0x1e   :  { %410 = vmatpush.bf16.msrb.mxu1 %v1293_v4 }
  0x22   :  { %267 = vperm.xlu2 %1329, %v250_v13  }
  0x23   :  { %68 = vperm.xlu1 %1328, %v47_v14   ;;  %65 = vperm.xlu0 %1327, %v46_v15  }
  0x2a   :  { %74 = vperm.xlu2 %1329, %v49_v16  }
  0x2b   :  { %71 = vperm.xlu1 %1328, %v48_v17   ;;  %270 = vperm.xlu0 %1327, %v251_v18  }
  0x32   :  { %279 = vperm.xlu2 %1329, %v254_v19  }
  0x33   :  { %276 = vperm.xlu1 %1328, %v253_v20   ;;  %273 = vperm.xlu0 %1327, %v252_v21  }
  0x3a   :  { %288 = vperm.xlu2 %1329, %v257_v22  }
  0x3b   :  { %285 = vperm.xlu1 %1328, %v256_v23   ;;  %282 = vperm.xlu0 %1327, %v255_v24  }
  0x42   :  { %297 = vperm.xlu2 %1329, %v260_v25  }
  0x43   :  { %294 = vperm.xlu1 %1328, %v259_v26   ;;  %291 = vperm.xlu0 %1327, %v258_v27  }
  0x4a   :  { %306 = vperm.xlu2 %1329, %v263_v28  }
  0x4b   :  { %303 = vperm.xlu1 %1328, %v262_v29   ;;  %300 = vperm.xlu0 %1327, %v261_v30   ;;  %v1296_v30 = vld [vmem:[%s1779_s4] sm:$0xff] }
  0x4c   :  { %582 = vmatpush.bf16.msra.mxu3 %v1296_v30  ;;  %v1302_v30 = vld [vmem:[%s1782_s7 + $0x20] sm:$0xff] }
  0x53   :  { %312 = vperm.xlu1 %1328, %v265_v31   ;;  %309 = vperm.xlu0 %1327, %v264_v32  }
  0x5c   :  { %v90_v36 = vpop.permute.xlu2 %89 }
  0x5d   :  { %vm120_vm7 = vcmp.eq.s32.totalorder %v90_v36, %v1542_v40 }
  0x5e   :  { %v136_v0 = vsel %vm120_vm7, 1.0, %v1365_v44 }
  0x64   :  { %v93_v41 = vpop.permute.xlu2 %92 }
  0x65   :  { %vm121_vm8 = vcmp.eq.s32.totalorder %v93_v41, %v1542_v40 }
  0x66   :  { %v137_v1 = vsel %vm121_vm8, 1.0, %v1365_v44 }
  0x67   :  { %v148_v3 = vpack.c.bf16 %v137_v1, %v136_v0 }
  0x6c   :  { %v102_v49 = vpop.permute.xlu2 %101 }
  0x6d   :  { %vm124_vm13 = vcmp.eq.s32.totalorder %v102_v49, %v1542_v40 }
  0x6e   :  { %v140_v12 = vsel %vm124_vm13, 1.0, %v1365_v44 }
  0x74   :  { %v111_v56 = vpop.permute.xlu2 %110 }
  0x75   :  { %v84_v38 = vpop.permute.xlu1 %83  ;;  %v78_v39 = vpop.permute.xlu0 %77  ;;  %vm127_vm15 = vcmp.eq.s32.totalorder %v111_v56, %v1542_v40 }
  0x76   :  { %vm116_vm0 = vcmp.eq.s32.totalorder %v78_v39, %v1542_v40  ;;  %vm118_vm3 = vcmp.eq.s32.totalorder %v84_v38, %v1542_v40  ;;  %v143_v15 = vsel %vm127_vm15, 1.0, %v1365_v44 }
  0x77   :  { %v132_v45 = vsel %vm116_vm0, 1.0, %v1365_v44  ;;  %v134_v52 = vsel %vm118_vm3, 1.0, %v1365_v44 }
  0x7c   :  { %v268_v63 = vpop.permute.xlu2 %267 }
  0x7d   :  { %v87_v42 = vpop.permute.xlu1 %86  ;;  %v81_v43 = vpop.permute.xlu0 %80  ;;  %vm314_vm3 = vcmp.eq.s32.totalorder %v268_v63, %v1542_v40 }
  0x7e   :  { %vm117_vm1 = vcmp.eq.s32.totalorder %v81_v43, %v1542_v40  ;;  %vm119_vm4 = vcmp.eq.s32.totalorder %v87_v42, %v1542_v40  ;;  %v330_v20 = vsel %vm314_vm3, 1.0, %v1365_v44 }
  0x7f   :  { %v133_v46 = vsel %vm117_vm1, 1.0, %v1365_v44  ;;  %v135_v53 = vsel %vm119_vm4, 1.0, %v1365_v44  ;;  %vm378_vm4 = vcmask 392192  }
  0x80   :  { %v146_v47 = vpack.c.bf16 %v133_v46, %v132_v45  ;;  %v147_v57 = vpack.c.bf16 %v135_v53, %v134_v52 }
  0x82   :  { %1144 = vmatmul.msk.bf16.vlgmr.msra.gmra.mxu1 %vm168_vm2, %v146_v47 }
  0x84   :  { %v75_v5 = vpop.permute.xlu2 %74 }
  0x85   :  { %v99_v50 = vpop.permute.xlu1 %98  ;;  %v96_v51 = vpop.permute.xlu0 %95  ;;  %vm115_vm10 = vcmp.eq.s32.totalorder %v75_v5, %v1542_v40 }
  0x86   :  { %v131_v7 = vsel %vm115_vm10, 1.0, %v1365_v44  ;;  %vm123_vm11 = vcmp.eq.s32.totalorder %v99_v50, %v1542_v40  ;;  %vm122_vm12 = vcmp.eq.s32.totalorder %v96_v51, %v1542_v40 }
  0x87   :  { %v139_v9 = vsel %vm123_vm11, 1.0, %v1365_v44  ;;  %v138_v10 = vsel %vm122_vm12, 1.0, %v1365_v44  ;;  %vm471_vm12 = vcmask 130048  }
  0x88   :  { %v149_v11 = vpack.c.bf16 %v139_v9, %v138_v10 }
  0x8c   :  { %v280_v28 = vpop.permute.xlu2 %279 }
  0x8d   :  { %v108_v54 = vpop.permute.xlu1 %107  ;;  %v105_v55 = vpop.permute.xlu0 %104  ;;  %vm318_vm7 = vcmp.eq.s32.totalorder %v280_v28, %v1542_v40 }
  0x8e   :  { %vm125_vm14 = vcmp.eq.s32.totalorder %v105_v55, %v1542_v40  ;;  %vm126_vm0 = vcmp.eq.s32.totalorder %v108_v54, %v1542_v40  ;;  %v334_v31 = vsel %vm318_vm7, 1.0, %v1365_v44 }
  0x8f   :  { %v141_v13 = vsel %vm125_vm14, 1.0, %v1365_v44  ;;  %v142_v16 = vsel %vm126_vm0, 1.0, %v1365_v44 }
  0x90   :  { %v150_v14 = vpack.c.bf16 %v141_v13, %v140_v12  ;;  %v151_v17 = vpack.c.bf16 %v143_v15, %v142_v16 }
  0x92   :  { %1145 = vmatmul.msk.bf16.gmra.mxu1 %vm168_vm2, %v147_v57 }
  0x94   :  { %v289_v36 = vpop.permute.xlu2 %288 }
  0x95   :  { %v69_v58 = vpop.permute.xlu1 %68  ;;  %v66_v59 = vpop.permute.xlu0 %65 }
  0x96   :  { %vm113_vm5 = vcmp.eq.s32.totalorder %v69_v58, %v1542_v40  ;;  %vm112_vm6 = vcmp.eq.s32.totalorder %v66_v59, %v1542_v40 }
  0x97   :  { %v129_v60 = vsel %vm113_vm5, 1.0, %v1365_v44  ;;  %v128_v61 = vsel %vm112_vm6, 1.0, %v1365_v44 }
  0x98   :  { %v144_v62 = vpack.c.bf16 %v129_v60, %v128_v61 }
  0x9a   :  { %1142 = vmatmul.msk.bf16.vlgmr.msra.gmra.mxu0 %vm168_vm2, %v144_v62 }
  0x9c   :  { %v298_v56 = vpop.permute.xlu2 %297 }
  0x9d   :  { %v72_v2 = vpop.permute.xlu1 %71  ;;  %v271_v18 = vpop.permute.xlu0 %270  ;;  %vm324_vm14 = vcmp.eq.s32.totalorder %v298_v56, %v1542_v40 }
  0x9e   :  { %vm114_vm9 = vcmp.eq.s32.totalorder %v72_v2, %v1542_v40  ;;  %vm315_vm1 = vcmp.eq.s32.totalorder %v271_v18, %v1542_v40  ;;  %v340_v58 = vsel %vm324_vm14, 1.0, %v1365_v44 }
  0x9f   :  { %v130_v6 = vsel %vm114_vm9, 1.0, %v1365_v44  ;;  %v331_v19 = vsel %vm315_vm1, 1.0, %v1365_v44  ;;  %vm321_vm9 = vcmp.eq.s32.totalorder %v289_v36, %v1542_v40 }
  0xa0   :  { %v145_v8 = vpack.c.bf16 %v131_v7, %v130_v6  ;;  %v346_v21 = vpack.c.bf16 %v331_v19, %v330_v20  ;;  %v337_v38 = vsel %vm321_vm9, 1.0, %v1365_v44  ;;  %v1297_v7 = vld [vmem:[%s1780_s5] sm:$0xff] }
  0xa1   :  { %503 = vmatpush.bf16.msra.mxu2 %v1297_v7 }
  0xa2   :  { %1146 = vmatmul.msk.bf16.gmra.mxu1 %vm168_vm2, %v148_v3 }
  0xa4   :  { %v307_v1 = vpop.permute.xlu2 %306 }
  0xa5   :  { %v277_v22 = vpop.permute.xlu1 %276  ;;  %v274_v23 = vpop.permute.xlu0 %273  ;;  %vm327_vm0 = vcmp.eq.s32.totalorder %v307_v1, %v1542_v40 }
  0xa6   :  { %vm317_vm5 = vcmp.eq.s32.totalorder %v277_v22, %v1542_v40  ;;  %vm316_vm6 = vcmp.eq.s32.totalorder %v274_v23, %v1542_v40  ;;  %v343_v3 = vsel %vm327_vm0, 1.0, %v1365_v44 }
  0xa7   :  { %v333_v24 = vsel %vm317_vm5, 1.0, %v1365_v44  ;;  %v332_v25 = vsel %vm316_vm6, 1.0, %v1365_v44 }
  0xa8   :  { %v347_v26 = vpack.c.bf16 %v333_v24, %v332_v25  ;;  %v1303_v25 = vld [vmem:[%s1782_s7 + $0x28] sm:$0xff] }
  0xaa   :  { %1143 = vmatmul.msk.bf16.gmra.mxu0 %vm168_vm2, %v145_v8 }
  0xad   :  { %v283_v27 = vpop.permute.xlu0 %282  ;;  %v286_v34 = vpop.permute.xlu1 %285 }
  0xae   :  { %vm320_vm8 = vcmp.eq.s32.totalorder %v286_v34, %v1542_v40 }
  0xaf   :  { %v336_v37 = vsel %vm320_vm8, 1.0, %v1365_v44 }
  0xb0   :  { %v349_v41 = vpack.c.bf16 %v337_v38, %v336_v37 }
  0xb2   :  { %1147 = vmatmul.msk.bf16.gmra.mxu1 %vm168_vm2, %v149_v11 }
  0xb5   :  { %v295_v42 = vpop.permute.xlu1 %294  ;;  %v292_v43 = vpop.permute.xlu0 %291 }
  0xb6   :  { %vm323_vm10 = vcmp.eq.s32.totalorder %v295_v42, %v1542_v40  ;;  %vm322_vm11 = vcmp.eq.s32.totalorder %v292_v43, %v1542_v40 }
  0xb7   :  { %v339_v47 = vsel %vm323_vm10, 1.0, %v1365_v44  ;;  %v338_v48 = vsel %vm322_vm11, 1.0, %v1365_v44 }
  0xb8   :  { %v350_v51 = vpack.c.bf16 %v339_v47, %v338_v48 }
  0xbd   :  { %v301_v53 = vpop.permute.xlu0 %300  ;;  %v304_v63 = vpop.permute.xlu1 %303 }
  0xbe   :  { %vm325_vm13 = vcmp.eq.s32.totalorder %v301_v53, %v1542_v40  ;;  %vm326_vm15 = vcmp.eq.s32.totalorder %v304_v63, %v1542_v40 }
  0xbf   :  { %v341_v57 = vsel %vm325_vm13, 1.0, %v1365_v44  ;;  %v342_v2 = vsel %vm326_vm15, 1.0, %v1365_v44 }
  0xc0   :  { %v351_v61 = vpack.c.bf16 %v341_v57, %v340_v58  ;;  %v352_v5 = vpack.c.bf16 %v343_v3, %v342_v2 }
  0xc2   :  { %1148 = vmatmul.msk.bf16.gmra.mxu1 %vm168_vm2, %v150_v14 }
  0xc5   :  { %v313_v8 = vpop.permute.xlu1 %312  ;;  %v310_v9 = vpop.permute.xlu0 %309 }
  0xc6   :  { %vm329_vm1 = vcmp.eq.s32.totalorder %v313_v8, %v1542_v40  ;;  %vm328_vm3 = vcmp.eq.s32.totalorder %v310_v9, %v1542_v40  ;;  %v1312_v8 = vld [vmem:[%s1784_s9 + $0x30] sm:$0xff] }
  0xc7   :  { %v345_v11 = vsel %vm329_vm1, 1.0, %v1365_v44  ;;  %v344_v12 = vsel %vm328_vm3, 1.0, %v1365_v44 }
  0xc8   :  { %v353_v14 = vpack.c.bf16 %v345_v11, %v344_v12 }
  0xd2   :  { %1149 = vmatmul.msk.bf16.gmra.mxu1 %vm168_vm2, %v151_v17  ;;  %vm319_vm2 = vcmp.eq.s32.totalorder %v283_v27, %v1542_v40  ;;  %v1305_v17 = vld [vmem:[%s1782_s7 + $0x38] sm:$0xff] }
  0xd3   :  { %v335_v29 = vsel %vm319_vm2, 1.0, %v1365_v44  ;;  %735 = vmatpush.bf16.msrb.mxu2 %v1305_v17  ;;  %v1304_v44 = vld [vmem:[%s1782_s7 + $0x30] sm:$0xff] }
  0xd4   :  { %v348_v33 = vpack.c.bf16 %v335_v29, %v334_v31 }
  0xd7   :  { %736 = vmatpush.bf16.msrb.mxu2 %v1304_v44 }
  0xdb   :  { %737 = vmatpush.bf16.msrb.mxu2 %v1303_v25 }
  0xdf   :  { %738 = vmatpush.bf16.msrb.mxu2 %v1302_v30 }
  0xe2   :  { %1162 = vmatmul.msk.bf16.vlgmr.msrb.gmra.mxu1 %vm378_vm4, %v346_v21 }
  0xf2   :  { %1163 = vmatmul.msk.bf16.gmra.mxu1 %vm378_vm4, %v347_v26 }
  0xff   :  { %v212_v32 = vpop.f32.mrf.mxu1 }
 0x102   :  { %1164 = vmatmul.msk.bf16.gmra.mxu1 %vm378_vm4, %v348_v33 }
 0x107   :  { %v214_v35 = vpop.f32.mrf.mxu1 }
 0x108   :  { %v244_v6 = vpack.c.bf16 %v214_v35, %v212_v32  ;;  %v1301_v35 = vld [vmem:[%s1782_s7 + $0x18] sm:$0xff] }
 0x109   :  { %739 = vmatpush.bf16.msrb.mxu2 %v1301_v35 }
 0x10f   :  { %v217_v39 = vpop.f32.mrf.mxu1 }
 0x112   :  { %1165 = vmatmul.msk.bf16.gmra.mxu1 %vm378_vm4, %v349_v41 }
 0x117   :  { %v202_v45 = vpop.f32.mrf.mxu0  ;;  %v219_v46 = vpop.f32.mrf.mxu1 }
 0x118   :  { %v245_v15 = vpack.c.bf16 %v219_v46, %v217_v39  ;;  %v1300_v39 = vld [vmem:[%s1782_s7 + $0x10] sm:$0xff] }
 0x119   :  { %740 = vmatpush.bf16.msrb.mxu2 %v1300_v39 }
 0x11f   :  { %v204_v49 = vpop.f32.mrf.mxu0  ;;  %v222_v50 = vpop.f32.mrf.mxu1 }
 0x120   :  { %v242_v52 = vpack.c.bf16 %v204_v49, %v202_v45  ;;  %v1299_v45 = vld [vmem:[%s1782_s7 + $0x8] sm:$0xff] }
 0x121   :  { %741 = vmatpush.bf16.msrb.mxu2 %v1299_v45 }
 0x122   :  { %1166 = vmatmul.msk.bf16.gmra.mxu1 %vm378_vm4, %v350_v51  ;;  %1186 = vmatmul.msk.bf16.vlgmr.msra.gmra.mxu3 %vm471_vm12, %v242_v52  ;;  %v1298_v51 = vld [vmem:[%s1782_s7] sm:$0xff] }
 0x125   :  { %742 = vmatpush.bf16.msrb.mxu2 %v1298_v51 }
 0x127   :  { %v207_v54 = vpop.f32.mrf.mxu0  ;;  %v224_v55 = vpop.f32.mrf.mxu1 }
 0x128   :  { %v246_v19 = vpack.c.bf16 %v224_v55, %v222_v50 }
 0x12f   :  { %v209_v59 = vpop.f32.mrf.mxu0  ;;  %v227_v60 = vpop.f32.mrf.mxu1 }
 0x130   :  { %v243_v62 = vpack.c.bf16 %v209_v59, %v207_v54  ;;  %v1679_v59 = vld [vmem:[%s1781_s6] ss:$0 sm:$0xff] }
 0x132   :  { %1167 = vmatmul.msk.bf16.gmra.mxu1 %vm378_vm4, %v351_v61  ;;  %1187 = vmatmul.msk.bf16.gmra.mxu3 %vm471_vm12, %v243_v62 }
 0x137   :  { %v229_v0 = vpop.f32.mrf.mxu1 }
 0x138   :  { %v247_v22 = vpack.c.bf16 %v229_v0, %v227_v60  ;;  %v1313_v60 = vld [vmem:[%s1784_s9 + $0x38] sm:$0xff] }
 0x139   :  { %876 = vmatpush.bf16.msrb.mxu3 %v1313_v60 }
 0x13d   :  { %877 = vmatpush.bf16.msrb.mxu3 %v1312_v8 }
 0x13f   :  { %v232_v4 = vpop.f32.mrf.mxu1 }
 0x142   :  { %1168 = vmatmul.msk.bf16.gmra.mxu1 %vm378_vm4, %v352_v5  ;;  %1188 = vmatmul.msk.bf16.gmra.mxu3 %vm471_vm12, %v244_v6 }
 0x147   :  { %v234_v10 = vpop.f32.mrf.mxu1 }
 0x148   :  { %v248_v27 = vpack.c.bf16 %v234_v10, %v232_v4 }
 0x14f   :  { %v237_v13 = vpop.f32.mrf.mxu1 }
 0x152   :  { %1169 = vmatmul.msk.bf16.gmra.mxu1 %vm378_vm4, %v353_v14  ;;  %1189 = vmatmul.msk.bf16.gmra.mxu3 %vm471_vm12, %v245_v15 }
 0x157   :  { %v239_v16 = vpop.f32.mrf.mxu1 }
 0x158   :  { %v249_v32 = vpack.c.bf16 %v239_v16, %v237_v13 }
 0x15f   :  { %v412_v18 = vpop.f32.mrf.mxu1 }
 0x162   :  { %1190 = vmatmul.msk.bf16.gmra.mxu3 %vm471_vm12, %v246_v19  ;;  %v1311_v19 = vld [vmem:[%s1784_s9 + $0x28] sm:$0xff] }
 0x163   :  { %878 = vmatpush.bf16.msrb.mxu3 %v1311_v19 }
 0x167   :  { %v414_v40 = vpop.f32.mrf.mxu1 }
 0x168   :  { %v452_v20 = vpack.c.bf16 %v414_v40, %v412_v18 }
 0x16a   :  { %1174 = vmatmul.msk.bf16.vlgmr.msra.gmra.mxu2 %vm471_vm12, %v452_v20 }
 0x16f   :  { %v417_v21 = vpop.f32.mrf.mxu1 }
 0x172   :  { %1191 = vmatmul.msk.bf16.gmra.mxu3 %vm471_vm12, %v247_v22 }
 0x177   :  { %v419_v23 = vpop.f32.mrf.mxu1 }
 0x178   :  { %v453_v24 = vpack.c.bf16 %v419_v23, %v417_v21 }
 0x17a   :  { %1175 = vmatmul.msk.bf16.gmra.mxu2 %vm471_vm12, %v453_v24 }
 0x17f   :  { %v422_v26 = vpop.f32.mrf.mxu1 }
 0x182   :  { %1192 = vmatmul.msk.bf16.gmra.mxu3 %vm471_vm12, %v248_v27 }
 0x187   :  { %v424_v28 = vpop.f32.mrf.mxu1 }
 0x188   :  { %v454_v29 = vpack.c.bf16 %v424_v28, %v422_v26 }
 0x18a   :  { %1176 = vmatmul.msk.bf16.gmra.mxu2 %vm471_vm12, %v454_v29  ;;  %v1310_v29 = vld [vmem:[%s1784_s9 + $0x20] sm:$0xff] }
 0x18b   :  { %879 = vmatpush.bf16.msrb.mxu3 %v1310_v29 }
 0x18f   :  { %v427_v31 = vpop.f32.mrf.mxu1 }
 0x192   :  { %1193 = vmatmul.msk.bf16.gmra.mxu3 %vm471_vm12, %v249_v32 }
 0x197   :  { %v429_v33 = vpop.f32.mrf.mxu1 }
 0x198   :  { %v455_v34 = vpack.c.bf16 %v429_v33, %v427_v31 }
 0x19a   :  { %1177 = vmatmul.msk.bf16.gmra.mxu2 %vm471_vm12, %v455_v34 }
 0x19f   :  { %v432_v36 = vpop.f32.mrf.mxu1 }
 0x1a5   :  { %v584_v49 = vpop.f32.mrf.mxu3 }
 0x1a7   :  { %v434_v37 = vpop.f32.mrf.mxu1 }
 0x1a8   :  { %v456_v38 = vpack.c.bf16 %v434_v37, %v432_v36 }
 0x1aa   :  { %1178 = vmatmul.msk.bf16.gmra.mxu2 %vm471_vm12, %v456_v38 }
 0x1ad   :  { %v586_v54 = vpop.f32.mrf.mxu3 }
 0x1af   :  { %v437_v41 = vpop.f32.mrf.mxu1 }
 0x1b5   :  { %v589_v55 = vpop.f32.mrf.mxu3 }
 0x1b7   :  { %v439_v42 = vpop.f32.mrf.mxu1 }
 0x1b8   :  { %v457_v43 = vpack.c.bf16 %v439_v42, %v437_v41  ;;  %v1309_v41 = vld [vmem:[%s1784_s9 + $0x18] sm:$0xff] }
 0x1b9   :  { %880 = vmatpush.bf16.msrb.mxu3 %v1309_v41 }
 0x1ba   :  { %1179 = vmatmul.msk.bf16.gmra.mxu2 %vm471_vm12, %v457_v43 }
 0x1bd   :  { %v591_v56 = vpop.f32.mrf.mxu3 }
 0x1bf   :  { %v442_v46 = vpop.f32.mrf.mxu1 }
 0x1c5   :  { %v594_v0 = vpop.f32.mrf.mxu3 }
 0x1c7   :  { %v444_v47 = vpop.f32.mrf.mxu1 }
 0x1c8   :  { %v458_v48 = vpack.c.bf16 %v444_v47, %v442_v46 }
 0x1ca   :  { %1180 = vmatmul.msk.bf16.gmra.mxu2 %vm471_vm12, %v458_v48 }
 0x1cd   :  { %v596_v6 = vpop.f32.mrf.mxu3 }
 0x1cf   :  { %v447_v50 = vpop.f32.mrf.mxu1 }
 0x1d5   :  { %v599_v15 = vpop.f32.mrf.mxu3 }
 0x1d7   :  { %v449_v52 = vpop.f32.mrf.mxu1 }
 0x1d8   :  { %v459_v53 = vpack.c.bf16 %v449_v52, %v447_v50 }
 0x1da   :  { %1181 = vmatmul.msk.bf16.gmra.mxu2 %vm471_vm12, %v459_v53 }
 0x1dd   :  { %v601_v40 = vpop.f32.mrf.mxu3 }
 0x1e5   :  { %v604_v27 = vpop.f32.mrf.mxu3 }
 0x1ed   :  { %v505_v57 = vpop.f32.mrf.mxu2  ;;  %v606_v34 = vpop.f32.mrf.mxu3 }
 0x1ee   :  { %v585_v58 = vadd.f32 %v584_v49, %v505_v57 }
 0x1f0   :  { %v627_v62 = vadd.f32 %v1679_v59, %v585_v58 }
 0x1f2   :  { %v643_v2 = vmax.f32 %v627_v62, 0.0 }
 0x1f5   :  { %v507_v61 = vpop.f32.mrf.mxu2  ;;  %v609_v42 = vpop.f32.mrf.mxu3 }
 0x1f6   :  { %v587_v63 = vadd.f32 %v586_v54, %v507_v61  ;;  %v1308_v54 = vld [vmem:[%s1784_s9 + $0x10] sm:$0xff] }
 0x1f7   :  { %881 = vmatpush.bf16.msrb.mxu3 %v1308_v54 }
 0x1f8   :  { %v628_v1 = vadd.f32 %v1679_v59, %v587_v63 }
 0x1fa   :  { %v644_v3 = vmax.f32 %v628_v1, 0.0  ;;  %v1307_v1 = vld [vmem:[%s1784_s9 + $0x8] sm:$0xff] }
 0x1fb   :  { %882 = vmatpush.bf16.msrb.mxu3 %v1307_v1 }
 0x1fc   :  { %v659_v4 = vpack.c.bf16 %v644_v3, %v643_v2  ;;  %v1306_v2 = vld [vmem:[%s1784_s9] sm:$0xff] }
 0x1fd   :  { %v510_v5 = vpop.f32.mrf.mxu2  ;;  %v611_v51 = vpop.f32.mrf.mxu3 }
 0x1fe   :  { %743 = vmatmul.bf16.vlgmr.msrb.gmra.mxu2 %v659_v4  ;;  %v590_v7 = vadd.f32 %v589_v55, %v510_v5 }
 0x1ff   :  { %883 = vmatpush.bf16.msrb.mxu3 %v1306_v2  ;;  %v1321_v2 = vld [vmem:[%s1786_s11 + $0x38] sm:$0xff] }
 0x200   :  { %v629_v10 = vadd.f32 %v1679_v59, %v590_v7  ;;  %1017 = vmatpush.bf16.msrb.mxu0 %v1321_v2 }
 0x202   :  { %v645_v13 = vmax.f32 %v629_v10, 0.0 }
 0x205   :  { %v512_v9 = vpop.f32.mrf.mxu2  ;;  %v614_v58 = vpop.f32.mrf.mxu3 }
 0x206   :  { %v592_v11 = vadd.f32 %v591_v56, %v512_v9 }
 0x208   :  { %v630_v12 = vadd.f32 %v1679_v59, %v592_v11 }
 0x20a   :  { %v646_v14 = vmax.f32 %v630_v12, 0.0 }
 0x20c   :  { %v660_v16 = vpack.c.bf16 %v646_v14, %v645_v13 }
 0x20d   :  { %v515_v17 = vpop.f32.mrf.mxu2  ;;  %v616_v3 = vpop.f32.mrf.mxu3 }
 0x20e   :  { %748 = vmatmul.bf16.gmra.mxu2 %v660_v16  ;;  %v595_v18 = vadd.f32 %v594_v0, %v515_v17 }
 0x210   :  { %v631_v44 = vadd.f32 %v1679_v59, %v595_v18 }
 0x212   :  { %v647_v23 = vmax.f32 %v631_v44, 0.0 }
 0x215   :  { %v517_v20 = vpop.f32.mrf.mxu2  ;;  %v619_v11 = vpop.f32.mrf.mxu3 }
 0x216   :  { %v597_v21 = vadd.f32 %v596_v6, %v517_v20 }
 0x218   :  { %v632_v22 = vadd.f32 %v1679_v59, %v597_v21 }
 0x21a   :  { %v648_v24 = vmax.f32 %v632_v22, 0.0  ;;  %v1724_v22 = vld [vmem:[%s1783_s8] ss:$0 sm:$0xff] }
 0x21c   :  { %v661_v25 = vpack.c.bf16 %v648_v24, %v647_v23 }
 0x21d   :  { %v520_v26 = vpop.f32.mrf.mxu2 }
 0x21e   :  { %753 = vmatmul.bf16.gmra.mxu2 %v661_v25  ;;  %v600_v28 = vadd.f32 %v599_v15, %v520_v26  ;;  %v621_v15 = vpop.f32.mrf.mxu3 }
 0x220   :  { %v633_v31 = vadd.f32 %v1679_v59, %v600_v28 }
 0x222   :  { %v649_v35 = vmax.f32 %v633_v31, 0.0 }
 0x225   :  { %v522_v30 = vpop.f32.mrf.mxu2 }
 0x226   :  { %v602_v32 = vadd.f32 %v601_v40, %v522_v30 }
 0x228   :  { %v634_v33 = vadd.f32 %v1679_v59, %v602_v32 }
 0x22a   :  { %v650_v36 = vmax.f32 %v634_v33, 0.0 }
 0x22c   :  { %v662_v37 = vpack.c.bf16 %v650_v36, %v649_v35 }
 0x22d   :  { %v525_v38 = vpop.f32.mrf.mxu2 }
 0x22e   :  { %758 = vmatmul.bf16.gmra.mxu2 %v662_v37  ;;  %v605_v39 = vadd.f32 %v604_v27, %v525_v38 }
 0x230   :  { %v635_v45 = vadd.f32 %v1679_v59, %v605_v39 }
 0x232   :  { %v651_v48 = vmax.f32 %v635_v45, 0.0 }
 0x235   :  { %v527_v43 = vpop.f32.mrf.mxu2 }
 0x236   :  { %v607_v46 = vadd.f32 %v606_v34, %v527_v43 }
 0x238   :  { %v636_v47 = vadd.f32 %v1679_v59, %v607_v46 }
 0x23a   :  { %v652_v49 = vmax.f32 %v636_v47, 0.0 }
 0x23c   :  { %v663_v50 = vpack.c.bf16 %v652_v49, %v651_v48 }
 0x23d   :  { %v530_v52 = vpop.f32.mrf.mxu2 }
 0x23e   :  { %763 = vmatmul.bf16.gmra.mxu2 %v663_v50  ;;  %v610_v53 = vadd.f32 %v609_v42, %v530_v52 }
 0x240   :  { %v637_v56 = vadd.f32 %v1679_v59, %v610_v53 }
 0x242   :  { %v653_v61 = vmax.f32 %v637_v56, 0.0 }
 0x245   :  { %v532_v55 = vpop.f32.mrf.mxu2 }
 0x246   :  { %v612_v57 = vadd.f32 %v611_v51, %v532_v55 }
 0x248   :  { %v638_v60 = vadd.f32 %v1679_v59, %v612_v57 }
 0x24a   :  { %v654_v62 = vmax.f32 %v638_v60, 0.0 }
 0x24c   :  { %v664_v63 = vpack.c.bf16 %v654_v62, %v653_v61 }
 0x24d   :  { %v535_v0 = vpop.f32.mrf.mxu2 }
 0x24e   :  { %768 = vmatmul.bf16.gmra.mxu2 %v664_v63  ;;  %v615_v4 = vadd.f32 %v614_v58, %v535_v0 }
 0x250   :  { %v639_v6 = vadd.f32 %v1679_v59, %v615_v4  ;;  %v1320_v4 = vld [vmem:[%s1786_s11 + $0x30] sm:$0xff] }
 0x251   :  { %1018 = vmatpush.bf16.msrb.mxu0 %v1320_v4 }
 0x252   :  { %v655_v9 = vmax.f32 %v639_v6, 0.0 }
 0x255   :  { %v537_v5 = vpop.f32.mrf.mxu2 }
 0x256   :  { %v617_v7 = vadd.f32 %v616_v3, %v537_v5  ;;  %v1319_v5 = vld [vmem:[%s1786_s11 + $0x28] sm:$0xff] }
 0x257   :  { %1019 = vmatpush.bf16.msrb.mxu0 %v1319_v5 }
 0x258   :  { %v640_v8 = vadd.f32 %v1679_v59, %v617_v7 }
 0x25a   :  { %v656_v10 = vmax.f32 %v640_v8, 0.0 }
 0x25c   :  { %v665_v12 = vpack.c.bf16 %v656_v10, %v655_v9  ;;  %v1318_v9 = vld [vmem:[%s1786_s11 + $0x20] sm:$0xff] }
 0x25d   :  { %v540_v13 = vpop.f32.mrf.mxu2  ;;  %1020 = vmatpush.bf16.msrb.mxu0 %v1318_v9 }
 0x25e   :  { %773 = vmatmul.bf16.gmra.mxu2 %v665_v12  ;;  %v620_v14 = vadd.f32 %v619_v11, %v540_v13  ;;  %v1317_v13 = vld [vmem:[%s1786_s11 + $0x18] sm:$0xff] }
 0x260   :  { %v641_v17 = vadd.f32 %v1679_v59, %v620_v14 }
 0x261   :  { %1021 = vmatpush.bf16.msrb.mxu0 %v1317_v13 }
 0x262   :  { %v657_v40 = vmax.f32 %v641_v17, 0.0 }
 0x265   :  { %v542_v16 = vpop.f32.mrf.mxu2 }
 0x266   :  { %v622_v18 = vadd.f32 %v621_v15, %v542_v16  ;;  %v1316_v15 = vld [vmem:[%s1786_s11 + $0x10] sm:$0xff]  ;;  %v1315_v16 = vld [vmem:[%s1786_s11 + $0x8] sm:$0xff] }
 0x267   :  { %1022 = vmatpush.bf16.msrb.mxu0 %v1316_v15 }
 0x268   :  { %v642_v19 = vadd.f32 %v1679_v59, %v622_v18 }
 0x26a   :  { %v658_v20 = vmax.f32 %v642_v19, 0.0 }
 0x26b   :  { %1023 = vmatpush.bf16.msrb.mxu0 %v1315_v16 }
 0x26c   :  { %v666_v44 = vpack.c.bf16 %v658_v20, %v657_v40 }
 0x26e   :  { %778 = vmatmul.bf16.gmra.mxu2 %v666_v44  ;;  %v1314_v44 = vld [vmem:[%s1786_s11] sm:$0xff] }
 0x26f   :  { %1024 = vmatpush.bf16.msrb.mxu0 %v1314_v44 }
 0x281   :  { %v744_v21 = vpop.f32.mrf.mxu2 }
 0x282   :  { %v745_v23 = vadd.f32 %v1724_v22, %v744_v21 }
 0x284   :  { %v784_v26 = vmax.f32 %v745_v23, 0.0 }
 0x289   :  { %v746_v24 = vpop.f32.mrf.mxu2 }
 0x28a   :  { %v747_v25 = vadd.f32 %v1724_v22, %v746_v24  ;;  %v1332_v24 = vld [vmem:[%s1785_s10] ss:$0 sm:$0xff] }
 0x28c   :  { %v785_v27 = vmax.f32 %v747_v25, 0.0 }
 0x28e   :  { %v800_v28 = vpack.c.bf16 %v785_v27, %v784_v26 }
 0x290   :  { %884 = vmatmul.bf16.vlgmr.msrb.gmra.mxu3 %v800_v28 }
 0x291   :  { %v749_v59 = vpop.f32.mrf.mxu2 }
 0x292   :  { %v750_v29 = vadd.f32 %v1724_v22, %v749_v59 }
 0x294   :  { %v786_v32 = vmax.f32 %v750_v29, 0.0 }
 0x299   :  { %v751_v30 = vpop.f32.mrf.mxu2 }
 0x29a   :  { %v752_v31 = vadd.f32 %v1724_v22, %v751_v30 }
 0x29c   :  { %v787_v33 = vmax.f32 %v752_v31, 0.0 }
 0x29e   :  { %v801_v34 = vpack.c.bf16 %v787_v33, %v786_v32 }
 0x2a0   :  { %889 = vmatmul.bf16.gmra.mxu3 %v801_v34 }
 0x2a1   :  { %v754_v35 = vpop.f32.mrf.mxu2 }
 0x2a2   :  { %v755_v36 = vadd.f32 %v1724_v22, %v754_v35 }
 0x2a4   :  { %v788_v39 = vmax.f32 %v755_v36, 0.0 }
 0x2a9   :  { %v756_v37 = vpop.f32.mrf.mxu2 }
 0x2aa   :  { %v757_v38 = vadd.f32 %v1724_v22, %v756_v37 }
 0x2ac   :  { %v789_v41 = vmax.f32 %v757_v38, 0.0 }
 0x2ae   :  { %v802_v42 = vpack.c.bf16 %v789_v41, %v788_v39 }
 0x2b0   :  { %894 = vmatmul.bf16.gmra.mxu3 %v802_v42 }
 0x2b1   :  { %v759_v43 = vpop.f32.mrf.mxu2 }
 0x2b2   :  { %v760_v45 = vadd.f32 %v1724_v22, %v759_v43 }
 0x2b4   :  { %v790_v48 = vmax.f32 %v760_v45, 0.0 }
 0x2b9   :  { %v761_v46 = vpop.f32.mrf.mxu2 }
 0x2ba   :  { %v762_v47 = vadd.f32 %v1724_v22, %v761_v46 }
 0x2bc   :  { %v791_v49 = vmax.f32 %v762_v47, 0.0 }
 0x2be   :  { %v803_v50 = vpack.c.bf16 %v791_v49, %v790_v48 }
 0x2c0   :  { %899 = vmatmul.bf16.gmra.mxu3 %v803_v50 }
 0x2c1   :  { %v764_v51 = vpop.f32.mrf.mxu2 }
 0x2c2   :  { %v765_v52 = vadd.f32 %v1724_v22, %v764_v51 }
 0x2c4   :  { %v792_v55 = vmax.f32 %v765_v52, 0.0 }
 0x2c9   :  { %v766_v53 = vpop.f32.mrf.mxu2 }
 0x2ca   :  { %v767_v54 = vadd.f32 %v1724_v22, %v766_v53 }
 0x2cc   :  { %v793_v56 = vmax.f32 %v767_v54, 0.0 }
 0x2ce   :  { %v804_v57 = vpack.c.bf16 %v793_v56, %v792_v55 }
 0x2d0   :  { %904 = vmatmul.bf16.gmra.mxu3 %v804_v57 }
 0x2d1   :  { %v769_v58 = vpop.f32.mrf.mxu2 }
 0x2d2   :  { %v770_v60 = vadd.f32 %v1724_v22, %v769_v58 }
 0x2d4   :  { %v794_v63 = vmax.f32 %v770_v60, 0.0 }
 0x2d9   :  { %v771_v61 = vpop.f32.mrf.mxu2 }
 0x2da   :  { %v772_v62 = vadd.f32 %v1724_v22, %v771_v61 }
 0x2dc   :  { %v795_v0 = vmax.f32 %v772_v62, 0.0 }
 0x2de   :  { %v805_v1 = vpack.c.bf16 %v795_v0, %v794_v63 }
 0x2e0   :  { %909 = vmatmul.bf16.gmra.mxu3 %v805_v1 }
 0x2e1   :  { %v774_v3 = vpop.f32.mrf.mxu2 }
 0x2e2   :  { %v775_v6 = vadd.f32 %v1724_v22, %v774_v3 }
 0x2e4   :  { %v796_v10 = vmax.f32 %v775_v6, 0.0 }
 0x2e9   :  { %v776_v7 = vpop.f32.mrf.mxu2 }
 0x2ea   :  { %v777_v8 = vadd.f32 %v1724_v22, %v776_v7 }
 0x2ec   :  { %v797_v11 = vmax.f32 %v777_v8, 0.0 }
 0x2ee   :  { %v806_v12 = vpack.c.bf16 %v797_v11, %v796_v10 }
 0x2f0   :  { %914 = vmatmul.bf16.gmra.mxu3 %v806_v12 }
 0x2f1   :  { %v779_v14 = vpop.f32.mrf.mxu2 }
 0x2f2   :  { %v780_v17 = vadd.f32 %v1724_v22, %v779_v14 }
 0x2f4   :  { %v798_v40 = vmax.f32 %v780_v17, 0.0  ;;  %v1333_v17 = vld [vmem:[%s1787_s12] ss:$0 sm:$0xff]  ;;  %s1366_s12 = smov [#allocation2]  }
 0x2f5   :  { %s1123_s30 = sshll.u32 %s1366_s12, 4  ;;  %s1124_s30 = int_to_ptr.vmem [resolvable:$true] %s1123_s30 }
 0x2f9   :  { %v781_v18 = vpop.f32.mrf.mxu2 }
 0x2fa   :  { %v782_v19 = vadd.f32 %v1724_v22, %v781_v18 }
 0x2fc   :  { %v799_v20 = vmax.f32 %v782_v19, 0.0 }
 0x2fe   :  { %v807_v21 = vpack.c.bf16 %v799_v20, %v798_v40 }
 0x300   :  { %919 = vmatmul.bf16.gmra.mxu3 %v807_v21 }
 0x313   :  { %v885_v23 = vpop.f32.mrf.mxu3 }
 0x314   :  { %v886_v25 = vadd.f32 %v1332_v24, %v885_v23 }
 0x316   :  { %v925_v28 = vmax.f32 %v886_v25, 0.0 }
 0x31b   :  { %v887_v26 = vpop.f32.mrf.mxu3 }
 0x31c   :  { %v888_v27 = vadd.f32 %v1332_v24, %v887_v26 }
 0x31e   :  { %v926_v22 = vmax.f32 %v888_v27, 0.0 }
 0x320   :  { %v941_v59 = vpack.c.bf16 %v926_v22, %v925_v28 }
 0x322   :  { %1025 = vmatmul.bf16.vlgmr.msrb.gmra.mxu0 %v941_v59 }
 0x323   :  { %v890_v29 = vpop.f32.mrf.mxu3 }
 0x324   :  { %v891_v30 = vadd.f32 %v1332_v24, %v890_v29 }
 0x326   :  { %v927_v33 = vmax.f32 %v891_v30, 0.0 }
 0x32b   :  { %v892_v31 = vpop.f32.mrf.mxu3 }
 0x32c   :  { %v893_v32 = vadd.f32 %v1332_v24, %v892_v31 }
 0x32e   :  { %v928_v34 = vmax.f32 %v893_v32, 0.0 }
 0x330   :  { %v942_v35 = vpack.c.bf16 %v928_v34, %v927_v33 }
 0x332   :  { %1030 = vmatmul.bf16.gmra.mxu0 %v942_v35 }
 0x333   :  { %v895_v36 = vpop.f32.mrf.mxu3 }
 0x334   :  { %v896_v37 = vadd.f32 %v1332_v24, %v895_v36 }
 0x336   :  { %v929_v41 = vmax.f32 %v896_v37, 0.0 }
 0x33b   :  { %v897_v38 = vpop.f32.mrf.mxu3 }
 0x33c   :  { %v898_v39 = vadd.f32 %v1332_v24, %v897_v38 }
 0x33e   :  { %v930_v42 = vmax.f32 %v898_v39, 0.0 }
 0x340   :  { %v943_v43 = vpack.c.bf16 %v930_v42, %v929_v41 }
 0x342   :  { %1035 = vmatmul.bf16.gmra.mxu0 %v943_v43 }
 0x343   :  { %v900_v45 = vpop.f32.mrf.mxu3 }
 0x344   :  { %v901_v46 = vadd.f32 %v1332_v24, %v900_v45 }
 0x346   :  { %v931_v49 = vmax.f32 %v901_v46, 0.0 }
 0x34b   :  { %v902_v47 = vpop.f32.mrf.mxu3 }
 0x34c   :  { %v903_v48 = vadd.f32 %v1332_v24, %v902_v47 }
 0x34e   :  { %v932_v50 = vmax.f32 %v903_v48, 0.0 }
 0x350   :  { %v944_v51 = vpack.c.bf16 %v932_v50, %v931_v49 }
 0x352   :  { %1040 = vmatmul.bf16.gmra.mxu0 %v944_v51 }
 0x353   :  { %v905_v52 = vpop.f32.mrf.mxu3 }
 0x354   :  { %v906_v53 = vadd.f32 %v1332_v24, %v905_v52 }
 0x356   :  { %v933_v56 = vmax.f32 %v906_v53, 0.0 }
 0x35b   :  { %v907_v54 = vpop.f32.mrf.mxu3 }
 0x35c   :  { %v908_v55 = vadd.f32 %v1332_v24, %v907_v54 }
 0x35e   :  { %v934_v57 = vmax.f32 %v908_v55, 0.0 }
 0x360   :  { %v945_v58 = vpack.c.bf16 %v934_v57, %v933_v56 }
 0x362   :  { %1045 = vmatmul.bf16.gmra.mxu0 %v945_v58 }
 0x363   :  { %v910_v60 = vpop.f32.mrf.mxu3 }
 0x364   :  { %v911_v61 = vadd.f32 %v1332_v24, %v910_v60 }
 0x366   :  { %v935_v0 = vmax.f32 %v911_v61, 0.0 }
 0x36b   :  { %v912_v62 = vpop.f32.mrf.mxu3 }
 0x36c   :  { %v913_v63 = vadd.f32 %v1332_v24, %v912_v62 }
 0x36e   :  { %v936_v1 = vmax.f32 %v913_v63, 0.0 }
 0x370   :  { %v946_v2 = vpack.c.bf16 %v936_v1, %v935_v0 }
 0x372   :  { %1050 = vmatmul.bf16.gmra.mxu0 %v946_v2 }
 0x373   :  { %v915_v3 = vpop.f32.mrf.mxu3 }
 0x374   :  { %v916_v4 = vadd.f32 %v1332_v24, %v915_v3 }
 0x376   :  { %v937_v7 = vmax.f32 %v916_v4, 0.0 }
 0x37b   :  { %v917_v5 = vpop.f32.mrf.mxu3 }
 0x37c   :  { %v918_v6 = vadd.f32 %v1332_v24, %v917_v5 }
 0x37e   :  { %v938_v8 = vmax.f32 %v918_v6, 0.0 }
 0x380   :  { %v947_v9 = vpack.c.bf16 %v938_v8, %v937_v7 }
 0x382   :  { %1055 = vmatmul.bf16.gmra.mxu0 %v947_v9 }
 0x383   :  { %v920_v10 = vpop.f32.mrf.mxu3 }
 0x384   :  { %v921_v11 = vadd.f32 %v1332_v24, %v920_v10 }
 0x386   :  { %v939_v14 = vmax.f32 %v921_v11, 0.0 }
 0x38b   :  { %v922_v12 = vpop.f32.mrf.mxu3 }
 0x38c   :  { %v923_v13 = vadd.f32 %v1332_v24, %v922_v12 }
 0x38e   :  { %v940_v15 = vmax.f32 %v923_v13, 0.0 }
 0x390   :  { %v948_v16 = vpack.c.bf16 %v940_v15, %v939_v14 }
 0x392   :  { %1060 = vmatmul.bf16.gmra.mxu0 %v948_v16 }
 0x39f   :  { %v1026_v18 = vpop.f32.mrf.mxu0 }
 0x3a0   :  { %v1027_v19 = vadd.f32 %v1333_v17, %v1026_v18 }
 0x3a2   :  { %1066 = vxpose.xlu2.b32.start [1/16] (narrow) %v1027_v19, 8 }
 0x3a7   :  { %v1028_v40 = vpop.f32.mrf.mxu0 }
 0x3a8   :  { %v1029_v20 = vadd.f32 %v1333_v17, %v1028_v40 }
 0x3aa   :  { %1067 = vxpose.xlu2.b32.cont [2/16] (narrow) %v1029_v20, 8 }
 0x3af   :  { %v1031_v44 = vpop.f32.mrf.mxu0 }
 0x3b0   :  { %v1032_v21 = vadd.f32 %v1333_v17, %v1031_v44 }
 0x3b2   :  { %1068 = vxpose.xlu2.b32.cont [3/16] (narrow) %v1032_v21, 8 }
 0x3b7   :  { %v1033_v23 = vpop.f32.mrf.mxu0 }
 0x3b8   :  { %v1034_v25 = vadd.f32 %v1333_v17, %v1033_v23 }
 0x3ba   :  { %1069 = vxpose.xlu2.b32.cont [4/16] (narrow) %v1034_v25, 8 }
 0x3bf   :  { %v1036_v24 = vpop.f32.mrf.mxu0 }
 0x3c0   :  { %v1037_v26 = vadd.f32 %v1333_v17, %v1036_v24 }
 0x3c2   :  { %1070 = vxpose.xlu2.b32.cont [5/16] (narrow) %v1037_v26, 8 }
 0x3c7   :  { %v1038_v27 = vpop.f32.mrf.mxu0 }
 0x3c8   :  { %v1039_v28 = vadd.f32 %v1333_v17, %v1038_v27 }
 0x3ca   :  { %1071 = vxpose.xlu2.b32.cont [6/16] (narrow) %v1039_v28, 8 }
 0x3cf   :  { %v1041_v22 = vpop.f32.mrf.mxu0 }
 0x3d0   :  { %v1042_v59 = vadd.f32 %v1333_v17, %v1041_v22 }
 0x3d2   :  { %1072 = vxpose.xlu2.b32.cont [7/16] (narrow) %v1042_v59, 8 }
 0x3d7   :  { %v1043_v29 = vpop.f32.mrf.mxu0 }
 0x3d8   :  { %v1044_v30 = vadd.f32 %v1333_v17, %v1043_v29 }
 0x3da   :  { %1073 = vxpose.xlu2.b32.cont [8/16] (narrow) %v1044_v30, 8 }
 0x3df   :  { %v1046_v31 = vpop.f32.mrf.mxu0 }
 0x3e0   :  { %v1047_v32 = vadd.f32 %v1333_v17, %v1046_v31 }
 0x3e2   :  { %1074 = vxpose.xlu2.b32.cont [9/16] (narrow) %v1047_v32, 8 }
 0x3e7   :  { %v1048_v33 = vpop.f32.mrf.mxu0 }
 0x3e8   :  { %v1049_v34 = vadd.f32 %v1333_v17, %v1048_v33 }
 0x3ea   :  { %1075 = vxpose.xlu2.b32.cont [10/16] (narrow) %v1049_v34, 8 }
 0x3ef   :  { %v1051_v35 = vpop.f32.mrf.mxu0 }
 0x3f0   :  { %v1052_v36 = vadd.f32 %v1333_v17, %v1051_v35 }
 0x3f2   :  { %1076 = vxpose.xlu2.b32.cont [11/16] (narrow) %v1052_v36, 8 }
 0x3f7   :  { %v1053_v37 = vpop.f32.mrf.mxu0 }
 0x3f8   :  { %v1054_v38 = vadd.f32 %v1333_v17, %v1053_v37 }
 0x3fa   :  { %1077 = vxpose.xlu2.b32.cont [12/16] (narrow) %v1054_v38, 8 }
 0x3ff   :  { %v1056_v39 = vpop.f32.mrf.mxu0 }
 0x400   :  { %v1057_v41 = vadd.f32 %v1333_v17, %v1056_v39 }
 0x402   :  { %1078 = vxpose.xlu2.b32.cont [13/16] (narrow) %v1057_v41, 8 }
 0x407   :  { %v1058_v42 = vpop.f32.mrf.mxu0 }
 0x408   :  { %v1059_v43 = vadd.f32 %v1333_v17, %v1058_v42 }
 0x40a   :  { %1079 = vxpose.xlu2.b32.cont [14/16] (narrow) %v1059_v43, 8 }
 0x40f   :  { %v1061_v45 = vpop.f32.mrf.mxu0 }
 0x410   :  { %v1062_v46 = vadd.f32 %v1333_v17, %v1061_v45 }
 0x412   :  { %1080 = vxpose.xlu2.b32.cont [15/16] (narrow) %v1062_v46, 8 }
 0x417   :  { %v1063_v47 = vpop.f32.mrf.mxu0 }
 0x418   :  { %v1064_v48 = vadd.f32 %v1333_v17, %v1063_v47 }
 0x41a   :  { %1081 = vxpose.xlu2.b32.end [16/16] (narrow) %v1064_v48, 8 }
 0x43b   :  { %v1082_v49 = vpop.trf.xlu2 }
 0x43c   :  { %v1290_v50 = vmul.f32 -1.442695, %v1082_v49 }
 0x43e   :  { %1334 = vpow2.f32 %v1290_v50 }
 0x444   :  { %v1335_v51 = vpop.eup %1334 }
 0x445   :  { %v1101_v52 = vadd.f32 1.0, %v1335_v51 }
 0x447   :  { %1336 = vrcp.f32 %v1101_v52  ;;  %v1113_v56 = vand.u32 2147483648, %v1101_v52  ;;  %v1111_v58 = vand.u32 2147483647, %v1101_v52  ;;  %vm1107_vm5 = vweird.f32 %v1101_v52 }
 0x449   :  { %v1114_v61 = vor.u32 1.1754944e-38, %v1113_v56  ;;  %vm1112_vm2 = vcmp.eq.f32.partialorder %v1111_v58, 8.507059e+37 }
 0x44d   :  { %v1337_v53 = vpop.eup %1336 }
 0x44e   :  { %v1103_v54 = vmul.f32 %v1337_v53, %v1101_v52  ;;  %vm1108_vm4 = vweird.f32 %v1337_v53 }
 0x44f   :  { %vm1109_vm6 = vmor %vm1107_vm5, %vm1108_vm4 }
 0x450   :  { %v1104_v55 = vsub.f32 1.0, %v1103_v54 }
 0x452   :  { %v1105_v57 = vmul.f32 %v1337_v53, %v1104_v55 }
 0x454   :  { %v1106_v60 = vadd.f32 %v1337_v53, %v1105_v57 }
 0x456   :  { %v1110_v62 = vsel %vm1109_vm6, %v1337_v53, %v1106_v60 }
 0x457   :  { %v1115_v63 = vsel %vm1112_vm2, %v1114_v61, %v1110_v62 }
 0x458   :  { %1117 = vst [vmem:[#allocation2] sm:$0x1] %v1115_v63 }
 0x459   :  { %1128 = dma.vmem_to_hbm [thread:$0]  %s1124_s30, 16, %s1126_s0, [#allocation3]  }
 0x45a   :  { %1362 = dma.done.wait [#allocation3], 16  }
 0x45b   :  { %1363 = vsyncadd [#allocation3], 4294967280 }
 0x45c   :  { %1133 = vsyncpa [#allocation3], 1 }

</bundles_post_ra>
